<compile_context>
chip_gen: v6e
topology: v6e:2x2x1
jax: 0.10.0
libtpu: 0.0.40
codegen_flags: <defaults>
</compile_context>

<pallas_src>
import functools

import jax
import jax.numpy as jnp
from jax import lax
from jax.experimental import pallas as pl
from jax.experimental.pallas import tpu as pltpu

STEPS = ((0, 0), (0, 0), (0, 0), (0, 0), (-2, 2), (0, 2), (2, 2),
         (-2, 0), (2, 0), (-2, -2), (0, -2), (2, -2))
PAD = 2      # reference uses pad=[2, 2, 2, 2]
LEAD = 128   # guard lanes before row -PAD in the yext scratch (128-aligned store)


def _shift_channel_ranges(c_out):
    """Map each distinct (s_h, s_w) step to merged channel ranges using it."""
    gd = c_out // len(STEPS)
    ranges = {}
    for idx, step in enumerate(STEPS):
        lo, hi = idx * gd, (idx + 1) * gd
        if lo == hi:
            continue
        ranges.setdefault(step, []).append((lo, hi))
    merged = {}
    for step, rs in ranges.items():
        rs = sorted(rs)
        acc = [list(rs[0])]
        for lo, hi in rs[1:]:
            if lo == acc[-1][1]:
                acc[-1][1] = hi
            else:
                acc.append([lo, hi])
        merged[step] = [tuple(r) for r in acc]
    return merged


def sconv_kernel(x_cur_ref, x_top_ref, x_bot_ref, w1_ref, b1_ref, w2_ref,
                 b2_ref, o_ref, yext_ref, *, W, C, TH, matmul_dtype):
    r = pl.program_id(1)
    last_r = pl.num_programs(1) - 1
    halo = PAD * W
    THW = TH * W

    w1 = w1_ref[...]                      # (C, C) already transposed [c_out, c_in]
    w2 = w2_ref[...]
    b1 = b1_ref[...]                      # (C, 1) float32
    b2 = b2_ref[...]

    x_cur = x_cur_ref[0]                  # (C, THW)   f32
    x_top = x_top_ref[0, 0][:, :halo]     # (C, halo)  rows [-2, 0) of the tile
    x_bot = x_bot_ref[0, 0][:, :halo]     # (C, halo)  rows [TH, TH+2)

    # --- conv1 fused over [top halo | tile | bottom halo]: one MXU matmul,
    # --- one bias add, ReLU applied here (commutes with the zero-padded shift).
    x_all = jnp.concatenate([x_top, x_cur, x_bot], axis=1)       # (C, THW+2*halo)
    y_all = jnp.dot(w1, x_all.astype(matmul_dtype),
                    preferred_element_type=jnp.float32) + b1
    y_all = jnp.maximum(y_all, 0.0)

    # Single 128-lane-aligned store of rows [-PAD, TH+PAD) into the scratch.
    yext_ref[:, LEAD:LEAD + THW + 2 * halo] = y_all

    # F.pad zero rows at the image top/bottom (relu(conv1(0)) != 0, so overwrite).
    @pl.when(r == 0)
    def _():
        yext_ref[:, LEAD:LEAD + halo] = jnp.zeros((C, halo), jnp.float32)

    @pl.when(r == last_r)
    def _():
        yext_ref[:, LEAD + halo + THW:LEAD + 2 * halo + THW] = (
            jnp.zeros((C, halo), jnp.float32))

    # --- spatial shift: per distinct (sh, sw) step, one static lane window of
    # --- the scratch + a disjoint select-chain (channel groups partition C).
    w_col = lax.broadcasted_iota(jnp.int32, (1, THW), 1) % W      # hoisted, once
    wmask = {-PAD: w_col >= PAD, 0: None, PAD: w_col < W - PAD}
    c_idx = lax.broadcasted_iota(jnp.int32, (C, 1), 0)

    shifted = jnp.zeros((C, THW), jnp.float32)
    for (sh, sw), ranges in _shift_channel_ranges(C).items():
        cmask = functools.reduce(
            jnp.logical_or, [(c_idx >= lo) & (c_idx < hi) for lo, hi in ranges])
        start = LEAD + (sh + PAD) * W + sw
        win = yext_ref[:, start:start + THW]
        # Guard lanes / wrapped lanes are only ever read where wmask is False.
        inner = win if wmask[sw] is None else jnp.where(wmask[sw], win, 0.0)
        shifted = jnp.where(cmask, inner, shifted)
    # Channels >= 12 * (C // 12), if any, stay zero (torch.zeros_like semantics),
    # matching relu(0) == 0.

    # --- conv2 + residual -------------------------------------------------------
    z = jnp.dot(w2, shifted.astype(matmul_dtype),
                preferred_element_type=jnp.float32) + b2
    o_ref[0] = (z + x_cur).astype(o_ref.dtype)


def _tpu_vmem_bytes():
    try:
        return int(pltpu.get_tpu_info().vmem_capacity_bytes)
    except Exception:
        return 64 << 20        # conservative default (v7x per-TensorCore VMEM)


def _pick_tile_h(H, W, C, B, budget_bytes):
    """Largest row tile TH with H % TH == 0, lane-dense flat rows
    ((TH*W) % 128 == 0) and an f32 x-block within budget; keeps >=2 grid steps
    when B == 1 (megacore).  Falls back to the full image."""
    valid = [d for d in range(max(PAD, 1), H + 1)
             if H % d == 0 and (d * W) % 128 == 0]
    if not valid:
        return H               # perf cliff (masked stores), not a wrong answer
    fitting = [d for d in valid if d * W * C * 4 <= budget_bytes]
    cand = fitting if fitting else [min(valid)]
    if B == 1:
        multi = [d for d in cand if H // d >= 2]
        if multi:
            return max(multi)
    return max(cand)


def sconv_forward(x_nchw, w1, b1, w2, b2, *, tile_h=None,
                  matmul_dtype=jnp.float32):
    """x_nchw: (B, C, H, W).  w1/w2: (C_in, C_out) == (C, C); b1/b2: (C,)."""
    B, C, H, W = x_nchw.shape
    assert w1.shape == (C, C) and w2.shape == (C, C)
    assert b1.shape == (C,) and b2.shape == (C,)

    phys_vmem = _tpu_vmem_bytes()
    if tile_h is None:
        budget = max(256 << 10, min(8 << 20, phys_vmem // 20))
        TH = _pick_tile_h(H, W, C, B, budget)
    else:
        TH = tile_h
    assert H % TH == 0, "tile_h must divide H"
    assert TH >= PAD, "row tile must cover the +-2 shift halo"
    HW, THW = H * W, TH * W
    assert THW % 128 == 0 or TH == H, "row tile must be lane-dense"
    nrt = H // TH

    halo = PAD * W
    HALO_PW = ((halo + 127) // 128) * 128          # lane-padded halo width
    YW = LEAD + (TH + 2 * PAD) * W + PAD           # scratch width (+trail guard)
    YW = ((YW + 127) // 128) * 128

    # ---- exact 2-row halos per tile, gathered once on the host/XLA side -------
    dt = x_nchw.dtype
    zrows = jnp.zeros((B, C, PAD, W), dt)
    tops = [zrows] + [x_nchw[:, :, r * TH - PAD:r * TH, :] for r in range(1, nrt)]
    bots = [x_nchw[:, :, (r + 1) * TH:(r + 1) * TH + PAD, :]
            for r in range(nrt - 1)] + [zrows]
    x_top = jnp.stack(tops, axis=1).reshape(B, nrt, C, halo)
    x_bot = jnp.stack(bots, axis=1).reshape(B, nrt, C, halo)
    if HALO_PW != halo:
        padw = ((0, 0), (0, 0), (0, 0), (0, HALO_PW - halo))
        x_top = jnp.pad(x_top, padw)
        x_bot = jnp.pad(x_bot, padw)

    x_flat = x_nchw.reshape(B, C, HW)                    # free row-major reshape
    w1_t = jnp.asarray(w1).T.astype(matmul_dtype)        # (C_out, C_in)
    w2_t = jnp.asarray(w2).T.astype(matmul_dtype)
    b1_c = jnp.asarray(b1, jnp.float32).reshape(C, 1)
    b2_c = jnp.asarray(b2, jnp.float32).reshape(C, 1)

    # ---- explicit VMEM limit from the actual working set ----------------------
    x_blk = C * THW * 4
    halo_blk = C * HALO_PW * 4
    yext_bytes = C * YW * 4
    params_bytes = (2 * C * C + 2 * C) * 4
    # 2x-buffered x/out blocks + 2x-buffered halo blocks + scratch + ~6 tile-
    # sized in-kernel f32 temporaries + weights/biases.
    est = 2 * (2 * x_blk + 2 * halo_blk) + yext_bytes + 6 * x_blk + 2 * params_bytes
    vmem_limit = max(32 << 20, int(est * 1.25) + (2 << 20))
    vmem_limit = min(vmem_limit, max(32 << 20, phys_vmem - (12 << 20)))

    kernel = functools.partial(sconv_kernel, W=W, C=C, TH=TH,
                               matmul_dtype=matmul_dtype)
    out_flat = pl.pallas_call(
        kernel,
        out_shape=jax.ShapeDtypeStruct((B, C, HW), x_nchw.dtype),
        grid_spec=pltpu.PrefetchScalarGridSpec(
            num_scalar_prefetch=0,
            grid=(B, nrt),
            in_specs=[
                # lane-dense flat row tile of x
                pl.BlockSpec((1, C, THW), lambda b, r: (b, 0, r)),
                # exactly the 2 rows above / below the tile (pre-gathered)
                pl.BlockSpec((1, 1, C, HALO_PW), lambda b, r: (b, r, 0, 0)),
                pl.BlockSpec((1, 1, C, HALO_PW), lambda b, r: (b, r, 0, 0)),
                pl.BlockSpec((C, C), lambda b, r: (0, 0)),
                pl.BlockSpec((C, 1), lambda b, r: (0, 0)),
                pl.BlockSpec((C, C), lambda b, r: (0, 0)),
                pl.BlockSpec((C, 1), lambda b, r: (0, 0)),
            ],
            out_specs=pl.BlockSpec((1, C, THW), lambda b, r: (b, 0, r)),
            scratch_shapes=[
                # extended relu(y): rows [-2, TH+2) flat over W, + guard lanes
                pltpu.VMEM((C, YW), jnp.float32),
            ]),
        compiler_params=pltpu.CompilerParams(
            dimension_semantics=("parallel", "parallel"),
            vmem_limit_bytes=vmem_limit),
    )(x_flat, x_top, x_bot, w1_t, b1_c, w2_t, b2_c)
    return out_flat.reshape(B, C, H, W)


def sconv_ref(x, w1, b1, w2, b2):
    """Pure-JAX NCHW reference mirroring the PyTorch module (float32)."""
    B, C, H, W = x.shape
    y = jnp.einsum('bchw,cd->bdhw', x, w1, preferred_element_type=jnp.float32)
    y = y + b1[None, :, None, None]
    gd = C // len(STEPS)
    yp = jnp.pad(y, ((0, 0), (0, 0), (PAD, PAD), (PAD, PAD)))
    out = jnp.zeros_like(y)
    for idx, (sh, sw) in enumerate(STEPS):
        lo, hi = idx * gd, (idx + 1) * gd
        out = out.at[:, lo:hi].set(
            yp[:, lo:hi, PAD + sh:PAD + sh + H, PAD + sw:PAD + sw + W])
    out = jnp.maximum(out, 0.0)
    z = jnp.einsum('bchw,cd->bdhw', out, w2, preferred_element_type=jnp.float32)
    z = z + b2[None, :, None, None]
    return z + x


if __name__ == "__main__":
    key = jax.random.PRNGKey(0)
    kx, k1, kb1, k2, kb2 = jax.random.split(key, 5)

    B, C, H, W = 2, 24, 16, 16   # n_feat == out == C (module implies square 1x1s)
    x = jax.random.normal(kx, (B, C, H, W), jnp.float32)
    w1 = jax.random.normal(k1, (C, C), jnp.float32) * 0.1
    b1 = jax.random.normal(kb1, (C,), jnp.float32) * 0.1
    w2 = jax.random.normal(k2, (C, C), jnp.float32) * 0.1
    b2 = jax.random.normal(kb2, (C,), jnp.float32) * 0.1

    ref = sconv_ref(x, w1, b1, w2, b2)

    # tile_h=8 exercises the multi-tile path (real row halos + boundary zeroing);
    # tile_h=None lets the budget-driven picker choose (full image here).
    for th in (8, None):
        out = jax.block_until_ready(sconv_forward(x, w1, b1, w2, b2, tile_h=th))
        assert out.shape == x.shape
        assert jnp.allclose(out, ref, atol=1e-3, rtol=1e-3), \
            f"mismatch vs float32 reference (tile_h={th})"
    print("KERNEL_OK")
</pallas_src>

<mosaic_0001>
module attributes {stable_mosaic.version = 11 : i64} {
  func.func @sconv_kernel(%arg0: i32, %arg1: i32, %arg2: memref<1x24x128xf32, #tpu.memory_space<vmem>>, %arg3: memref<1x1x24x128xf32, #tpu.memory_space<vmem>>, %arg4: memref<1x1x24x128xf32, #tpu.memory_space<vmem>>, %arg5: memref<24x24xf32, #tpu.memory_space<vmem>>, %arg6: memref<24x1xf32, #tpu.memory_space<vmem>>, %arg7: memref<24x24xf32, #tpu.memory_space<vmem>>, %arg8: memref<24x1xf32, #tpu.memory_space<vmem>>, %arg9: memref<1x24x128xf32, #tpu.memory_space<vmem>>, %arg10: memref<24x384xf32, #tpu.memory_space<vmem>>) attributes {dimension_semantics = [#tpu.dimension_semantics<parallel>, #tpu.dimension_semantics<parallel>], iteration_bounds = array<i64: 2, 2>, scalar_prefetch = 0 : i64, scratch_operands = 1 : i64, tpu.core_type = #tpu.core_type<tc>, window_params = [{transform_indices = @transform_0, window_bounds = array<i64: 1, 24, 128>}, {transform_indices = @transform_1, window_bounds = array<i64: 1, 1, 24, 128>}, {transform_indices = @transform_2, window_bounds = array<i64: 1, 1, 24, 128>}, {pipeline_mode = #tpu.pipeline_mode<synchronous>, transform_indices = @transform_3, window_bounds = array<i64: 24, 24>}, {pipeline_mode = #tpu.pipeline_mode<synchronous>, transform_indices = @transform_4, window_bounds = array<i64: 24, 1>}, {pipeline_mode = #tpu.pipeline_mode<synchronous>, transform_indices = @transform_5, window_bounds = array<i64: 24, 24>}, {pipeline_mode = #tpu.pipeline_mode<synchronous>, transform_indices = @transform_6, window_bounds = array<i64: 24, 1>}, {transform_indices = @transform_7, window_bounds = array<i64: 1, 24, 128>}]} {
    %c0 = arith.constant 0 : index
    %c0_0 = arith.constant 0 : index
    %0 = vector.load %arg5[%c0, %c0_0] : memref<24x24xf32, #tpu.memory_space<vmem>>, vector<24x24xf32>
    %c0_1 = arith.constant 0 : index
    %c0_2 = arith.constant 0 : index
    %1 = vector.load %arg7[%c0_1, %c0_2] : memref<24x24xf32, #tpu.memory_space<vmem>>, vector<24x24xf32>
    %c0_3 = arith.constant 0 : index
    %c0_4 = arith.constant 0 : index
    %2 = vector.load %arg6[%c0_3, %c0_4] : memref<24x1xf32, #tpu.memory_space<vmem>>, vector<24x1xf32>
    %c0_5 = arith.constant 0 : index
    %c0_6 = arith.constant 0 : index
    %3 = vector.load %arg8[%c0_5, %c0_6] : memref<24x1xf32, #tpu.memory_space<vmem>>, vector<24x1xf32>
    %c0_7 = arith.constant 0 : index
    %c0_8 = arith.constant 0 : index
    %c0_9 = arith.constant 0 : index
    %4 = vector.load %arg2[%c0_7, %c0_8, %c0_9] : memref<1x24x128xf32, #tpu.memory_space<vmem>>, vector<1x24x128xf32>
    %5 = vector.shape_cast %4 : vector<1x24x128xf32> to vector<24x128xf32>
    %c0_10 = arith.constant 0 : index
    %c0_11 = arith.constant 0 : index
    %c0_12 = arith.constant 0 : index
    %c0_13 = arith.constant 0 : index
    %6 = vector.load %arg3[%c0_10, %c0_11, %c0_12, %c0_13] : memref<1x1x24x128xf32, #tpu.memory_space<vmem>>, vector<1x1x24x128xf32>
    %7 = vector.shape_cast %6 : vector<1x1x24x128xf32> to vector<24x128xf32>
    %8 = vector.extract_strided_slice %7 {offsets = [0, 0], sizes = [24, 32], strides = [1, 1]} : vector<24x128xf32> to vector<24x32xf32>
    %c0_14 = arith.constant 0 : index
    %c0_15 = arith.constant 0 : index
    %c0_16 = arith.constant 0 : index
    %c0_17 = arith.constant 0 : index
    %9 = vector.load %arg4[%c0_14, %c0_15, %c0_16, %c0_17] : memref<1x1x24x128xf32, #tpu.memory_space<vmem>>, vector<1x1x24x128xf32>
    %10 = vector.shape_cast %9 : vector<1x1x24x128xf32> to vector<24x128xf32>
    %11 = vector.extract_strided_slice %10 {offsets = [0, 0], sizes = [24, 32], strides = [1, 1]} : vector<24x128xf32> to vector<24x32xf32>
    %12 = tpu.concatenate %8, %5, %11 in 1 : vector<24x32xf32>, vector<24x128xf32>, vector<24x32xf32> -> vector<24x192xf32>
    %cst = arith.constant dense<0.000000e+00> : vector<24x192xf32>
    %13 = tpu.matmul %0, %12, %cst {dimension_numbers = #tpu.dot_dimension_numbers<[1], [0], [0], [1], [0, 0, 1, 1], [], []>} : vector<24x24xf32>, vector<24x192xf32>, vector<24x192xf32> -> vector<24x192xf32>
    %14 = vector.broadcast %2 : vector<24x1xf32> to vector<24x192xf32>
    %15 = arith.addf %13, %14 : vector<24x192xf32>
    %cst_18 = arith.constant 0.000000e+00 : f32
    %16 = vector.broadcast %cst_18 : f32 to vector<24x192xf32>
    %17 = arith.maximumf %15, %16 : vector<24x192xf32>
    %c0_19 = arith.constant 0 : index
    %c128 = arith.constant 128 : index
    %18 = vector.load %arg10[%c0_19, %c128] : memref<24x384xf32, #tpu.memory_space<vmem>>, vector<24x192xf32>
    tpu.vector_store %arg10[%c0_19, %c128], %17 {strides = array<i32>} : memref<24x384xf32, #tpu.memory_space<vmem>>, vector<24x192xf32>,
    %c0_i32 = arith.constant 0 : i32
    %19 = arith.cmpi eq, %arg1, %c0_i32 : i32
    %20 = arith.extui %19 : i1 to i32
    %c0_i32_20 = arith.constant 0 : i32
    %21 = arith.cmpi ne, %20, %c0_i32_20 : i32
    scf.if %21 {
      %cst_59 = arith.constant 0.000000e+00 : f32
      %160 = vector.broadcast %cst_59 : f32 to vector<24x32xf32>
      %c0_60 = arith.constant 0 : index
      %c128_61 = arith.constant 128 : index
      %161 = vector.load %arg10[%c0_60, %c128_61] : memref<24x384xf32, #tpu.memory_space<vmem>>, vector<24x32xf32>
      tpu.vector_store %arg10[%c0_60, %c128_61], %160 {strides = array<i32>} : memref<24x384xf32, #tpu.memory_space<vmem>>, vector<24x32xf32>,
    } else {
    }
    %c1_i32 = arith.constant 1 : i32
    %22 = arith.cmpi eq, %arg1, %c1_i32 : i32
    %23 = arith.extui %22 : i1 to i32
    %c0_i32_21 = arith.constant 0 : i32
    %24 = arith.cmpi ne, %23, %c0_i32_21 : i32
    scf.if %24 {
      %cst_59 = arith.constant 0.000000e+00 : f32
      %160 = vector.broadcast %cst_59 : f32 to vector<24x32xf32>
      %c0_60 = arith.constant 0 : index
      %c288 = arith.constant 288 : index
      %161 = vector.load %arg10[%c0_60, %c288] : memref<24x384xf32, #tpu.memory_space<vmem>>, vector<24x32xf32>
      tpu.vector_store %arg10[%c0_60, %c288], %160 {strides = array<i32>} : memref<24x384xf32, #tpu.memory_space<vmem>>, vector<24x32xf32>,
    } else {
    }
    %25 = tpu.iota {dimensions = array<i32: 1>} : vector<1x128xi32>
    %c16_i32 = arith.constant 16 : i32
    %c0_i32_22 = arith.constant 0 : i32
    %26 = arith.cmpi eq, %c16_i32, %c0_i32_22 : i32
    %c1_i32_23 = arith.constant 1 : i32
    %27 = arith.select %26, %c1_i32_23, %c16_i32 : i32
    %28 = vector.broadcast %27 : i32 to vector<1x128xi32>
    %29 = arith.remsi %25, %28 : vector<1x128xi32>
    %c0_i32_24 = arith.constant 0 : i32
    %30 = vector.broadcast %c0_i32_24 : i32 to vector<1x128xi32>
    %31 = arith.cmpi ne, %29, %30 : vector<1x128xi32>
    %c0_i32_25 = arith.constant 0 : i32
    %32 = vector.broadcast %c0_i32_25 : i32 to vector<1x128xi32>
    %33 = arith.cmpi slt, %29, %32 : vector<1x128xi32>
    %c0_i32_26 = arith.constant 0 : i32
    %34 = arith.cmpi slt, %27, %c0_i32_26 : i32
    %35 = vector.broadcast %34 : i1 to vector<1x128xi1>
    %36 = vector.broadcast %35 : vector<1x128xi1> to vector<1x128xi1>
    %37 = arith.xori %33, %36 : vector<1x128xi1>
    %38 = arith.andi %37, %31 : vector<1x128xi1>
    %39 = vector.broadcast %27 : i32 to vector<1x128xi32>
    %40 = arith.addi %29, %39 : vector<1x128xi32>
    %41 = arith.select %38, %40, %29 : vector<1x128xi1>, vector<1x128xi32>
    %c2_i32 = arith.constant 2 : i32
    %42 = vector.broadcast %c2_i32 : i32 to vector<1x128xi32>
    %43 = arith.cmpi sge, %41, %42 : vector<1x128xi32>
    %c14_i32 = arith.constant 14 : i32
    %44 = vector.broadcast %c14_i32 : i32 to vector<1x128xi32>
    %45 = arith.cmpi slt, %41, %44 : vector<1x128xi32>
    %46 = tpu.iota {dimensions = array<i32: 0>} : vector<24x1xi32>
    %cst_27 = arith.constant 0.000000e+00 : f32
    %47 = vector.broadcast %cst_27 : f32 to vector<24x128xf32>
    %c0_i32_28 = arith.constant 0 : i32
    %48 = vector.broadcast %c0_i32_28 : i32 to vector<24x1xi32>
    %49 = arith.cmpi sge, %46, %48 : vector<24x1xi32>
    %c8_i32 = arith.constant 8 : i32
    %50 = vector.broadcast %c8_i32 : i32 to vector<24x1xi32>
    %51 = arith.cmpi slt, %46, %50 : vector<24x1xi32>
    %52 = arith.andi %49, %51 : vector<24x1xi1>
    %c0_29 = arith.constant 0 : index
    %c160 = arith.constant 160 : index
    %53 = vector.load %arg10[%c0_29, %c160] : memref<24x384xf32, #tpu.memory_space<vmem>>, vector<24x128xf32>
    %54 = vector.shape_cast %52 : vector<24x1xi1> to vector<24x1xi1>
    %55 = vector.broadcast %54 : vector<24x1xi1> to vector<24x128xi1>
    %56 = arith.select %55, %53, %47 : vector<24x128xi1>, vector<24x128xf32>
    %c8_i32_30 = arith.constant 8 : i32
    %57 = vector.broadcast %c8_i32_30 : i32 to vector<24x1xi32>
    %58 = arith.cmpi sge, %46, %57 : vector<24x1xi32>
    %c10_i32 = arith.constant 10 : i32
    %59 = vector.broadcast %c10_i32 : i32 to vector<24x1xi32>
    %60 = arith.cmpi slt, %46, %59 : vector<24x1xi32>
    %61 = arith.andi %58, %60 : vector<24x1xi1>
    %c0_31 = arith.constant 0 : index
    %c130 = arith.constant 130 : index
    %62 = vector.load %arg10[%c0_31, %c130] : memref<24x384xf32, #tpu.memory_space<vmem>>, vector<24x128xf32>
    %cst_32 = arith.constant 0.000000e+00 : f32
    %63 = vector.shape_cast %45 : vector<1x128xi1> to vector<1x128xi1>
    %64 = vector.broadcast %63 : vector<1x128xi1> to vector<24x128xi1>
    %65 = vector.broadcast %cst_32 : f32 to vector<24x128xf32>
    %66 = arith.select %64, %62, %65 : vector<24x128xi1>, vector<24x128xf32>
    %67 = vector.shape_cast %61 : vector<24x1xi1> to vector<24x1xi1>
    %68 = vector.broadcast %67 : vector<24x1xi1> to vector<24x128xi1>
    %69 = arith.select %68, %66, %56 : vector<24x128xi1>, vector<24x128xf32>
    %c10_i32_33 = arith.constant 10 : i32
    %70 = vector.broadcast %c10_i32_33 : i32 to vector<24x1xi32>
    %71 = arith.cmpi sge, %46, %70 : vector<24x1xi32>
    %c12_i32 = arith.constant 12 : i32
    %72 = vector.broadcast %c12_i32 : i32 to vector<24x1xi32>
    %73 = arith.cmpi slt, %46, %72 : vector<24x1xi32>
    %74 = arith.andi %71, %73 : vector<24x1xi1>
    %c0_34 = arith.constant 0 : index
    %c162 = arith.constant 162 : index
    %75 = vector.load %arg10[%c0_34, %c162] : memref<24x384xf32, #tpu.memory_space<vmem>>, vector<24x128xf32>
    %cst_35 = arith.constant 0.000000e+00 : f32
    %76 = vector.shape_cast %45 : vector<1x128xi1> to vector<1x128xi1>
    %77 = vector.broadcast %76 : vector<1x128xi1> to vector<24x128xi1>
    %78 = vector.broadcast %cst_35 : f32 to vector<24x128xf32>
    %79 = arith.select %77, %75, %78 : vector<24x128xi1>, vector<24x128xf32>
    %80 = vector.shape_cast %74 : vector<24x1xi1> to vector<24x1xi1>
    %81 = vector.broadcast %80 : vector<24x1xi1> to vector<24x128xi1>
    %82 = arith.select %81, %79, %69 : vector<24x128xi1>, vector<24x128xf32>
    %c12_i32_36 = arith.constant 12 : i32
    %83 = vector.broadcast %c12_i32_36 : i32 to vector<24x1xi32>
    %84 = arith.cmpi sge, %46, %83 : vector<24x1xi32>
    %c14_i32_37 = arith.constant 14 : i32
    %85 = vector.broadcast %c14_i32_37 : i32 to vector<24x1xi32>
    %86 = arith.cmpi slt, %46, %85 : vector<24x1xi32>
    %87 = arith.andi %84, %86 : vector<24x1xi1>
    %c0_38 = arith.constant 0 : index
    %c194 = arith.constant 194 : index
    %88 = vector.load %arg10[%c0_38, %c194] : memref<24x384xf32, #tpu.memory_space<vmem>>, vector<24x128xf32>
    %cst_39 = arith.constant 0.000000e+00 : f32
    %89 = vector.shape_cast %45 : vector<1x128xi1> to vector<1x128xi1>
    %90 = vector.broadcast %89 : vector<1x128xi1> to vector<24x128xi1>
    %91 = vector.broadcast %cst_39 : f32 to vector<24x128xf32>
    %92 = arith.select %90, %88, %91 : vector<24x128xi1>, vector<24x128xf32>
    %93 = vector.shape_cast %87 : vector<24x1xi1> to vector<24x1xi1>
    %94 = vector.broadcast %93 : vector<24x1xi1> to vector<24x128xi1>
    %95 = arith.select %94, %92, %82 : vector<24x128xi1>, vector<24x128xf32>
    %c14_i32_40 = arith.constant 14 : i32
    %96 = vector.broadcast %c14_i32_40 : i32 to vector<24x1xi32>
    %97 = arith.cmpi sge, %46, %96 : vector<24x1xi32>
    %c16_i32_41 = arith.constant 16 : i32
    %98 = vector.broadcast %c16_i32_41 : i32 to vector<24x1xi32>
    %99 = arith.cmpi slt, %46, %98 : vector<24x1xi32>
    %100 = arith.andi %97, %99 : vector<24x1xi1>
    %c0_42 = arith.constant 0 : index
    %c128_43 = arith.constant 128 : index
    %101 = vector.load %arg10[%c0_42, %c128_43] : memref<24x384xf32, #tpu.memory_space<vmem>>, vector<24x128xf32>
    %102 = vector.shape_cast %100 : vector<24x1xi1> to vector<24x1xi1>
    %103 = vector.broadcast %102 : vector<24x1xi1> to vector<24x128xi1>
    %104 = arith.select %103, %101, %95 : vector<24x128xi1>, vector<24x128xf32>
    %c16_i32_44 = arith.constant 16 : i32
    %105 = vector.broadcast %c16_i32_44 : i32 to vector<24x1xi32>
    %106 = arith.cmpi sge, %46, %105 : vector<24x1xi32>
    %c18_i32 = arith.constant 18 : i32
    %107 = vector.broadcast %c18_i32 : i32 to vector<24x1xi32>
    %108 = arith.cmpi slt, %46, %107 : vector<24x1xi32>
    %109 = arith.andi %106, %108 : vector<24x1xi1>
    %c0_45 = arith.constant 0 : index
    %c192 = arith.constant 192 : index
    %110 = vector.load %arg10[%c0_45, %c192] : memref<24x384xf32, #tpu.memory_space<vmem>>, vector<24x128xf32>
    %111 = vector.shape_cast %109 : vector<24x1xi1> to vector<24x1xi1>
    %112 = vector.broadcast %111 : vector<24x1xi1> to vector<24x128xi1>
    %113 = arith.select %112, %110, %104 : vector<24x128xi1>, vector<24x128xf32>
    %c18_i32_46 = arith.constant 18 : i32
    %114 = vector.broadcast %c18_i32_46 : i32 to vector<24x1xi32>
    %115 = arith.cmpi sge, %46, %114 : vector<24x1xi32>
    %c20_i32 = arith.constant 20 : i32
    %116 = vector.broadcast %c20_i32 : i32 to vector<24x1xi32>
    %117 = arith.cmpi slt, %46, %116 : vector<24x1xi32>
    %118 = arith.andi %115, %117 : vector<24x1xi1>
    %c0_47 = arith.constant 0 : index
    %c126 = arith.constant 126 : index
    %119 = vector.load %arg10[%c0_47, %c126] : memref<24x384xf32, #tpu.memory_space<vmem>>, vector<24x128xf32>
    %cst_48 = arith.constant 0.000000e+00 : f32
    %120 = vector.shape_cast %43 : vector<1x128xi1> to vector<1x128xi1>
    %121 = vector.broadcast %120 : vector<1x128xi1> to vector<24x128xi1>
    %122 = vector.broadcast %cst_48 : f32 to vector<24x128xf32>
    %123 = arith.select %121, %119, %122 : vector<24x128xi1>, vector<24x128xf32>
    %124 = vector.shape_cast %118 : vector<24x1xi1> to vector<24x1xi1>
    %125 = vector.broadcast %124 : vector<24x1xi1> to vector<24x128xi1>
    %126 = arith.select %125, %123, %113 : vector<24x128xi1>, vector<24x128xf32>
    %c20_i32_49 = arith.constant 20 : i32
    %127 = vector.broadcast %c20_i32_49 : i32 to vector<24x1xi32>
    %128 = arith.cmpi sge, %46, %127 : vector<24x1xi32>
    %c22_i32 = arith.constant 22 : i32
    %129 = vector.broadcast %c22_i32 : i32 to vector<24x1xi32>
    %130 = arith.cmpi slt, %46, %129 : vector<24x1xi32>
    %131 = arith.andi %128, %130 : vector<24x1xi1>
    %c0_50 = arith.constant 0 : index
    %c158 = arith.constant 158 : index
    %132 = vector.load %arg10[%c0_50, %c158] : memref<24x384xf32, #tpu.memory_space<vmem>>, vector<24x128xf32>
    %cst_51 = arith.constant 0.000000e+00 : f32
    %133 = vector.shape_cast %43 : vector<1x128xi1> to vector<1x128xi1>
    %134 = vector.broadcast %133 : vector<1x128xi1> to vector<24x128xi1>
    %135 = vector.broadcast %cst_51 : f32 to vector<24x128xf32>
    %136 = arith.select %134, %132, %135 : vector<24x128xi1>, vector<24x128xf32>
    %137 = vector.shape_cast %131 : vector<24x1xi1> to vector<24x1xi1>
    %138 = vector.broadcast %137 : vector<24x1xi1> to vector<24x128xi1>
    %139 = arith.select %138, %136, %126 : vector<24x128xi1>, vector<24x128xf32>
    %c22_i32_52 = arith.constant 22 : i32
    %140 = vector.broadcast %c22_i32_52 : i32 to vector<24x1xi32>
    %141 = arith.cmpi sge, %46, %140 : vector<24x1xi32>
    %c24_i32 = arith.constant 24 : i32
    %142 = vector.broadcast %c24_i32 : i32 to vector<24x1xi32>
    %143 = arith.cmpi slt, %46, %142 : vector<24x1xi32>
    %144 = arith.andi %141, %143 : vector<24x1xi1>
    %c0_53 = arith.constant 0 : index
    %c190 = arith.constant 190 : index
    %145 = vector.load %arg10[%c0_53, %c190] : memref<24x384xf32, #tpu.memory_space<vmem>>, vector<24x128xf32>
    %cst_54 = arith.constant 0.000000e+00 : f32
    %146 = vector.shape_cast %43 : vector<1x128xi1> to vector<1x128xi1>
    %147 = vector.broadcast %146 : vector<1x128xi1> to vector<24x128xi1>
    %148 = vector.broadcast %cst_54 : f32 to vector<24x128xf32>
    %149 = arith.select %147, %145, %148 : vector<24x128xi1>, vector<24x128xf32>
    %150 = vector.shape_cast %144 : vector<24x1xi1> to vector<24x1xi1>
    %151 = vector.broadcast %150 : vector<24x1xi1> to vector<24x128xi1>
    %152 = arith.select %151, %149, %139 : vector<24x128xi1>, vector<24x128xf32>
    %cst_55 = arith.constant dense<0.000000e+00> : vector<24x128xf32>
    %153 = tpu.matmul %1, %152, %cst_55 {dimension_numbers = #tpu.dot_dimension_numbers<[1], [0], [0], [1], [0, 0, 1, 1], [], []>} : vector<24x24xf32>, vector<24x128xf32>, vector<24x128xf32> -> vector<24x128xf32>
    %154 = vector.broadcast %3 : vector<24x1xf32> to vector<24x128xf32>
    %155 = arith.addf %153, %154 : vector<24x128xf32>
    %156 = arith.addf %155, %5 : vector<24x128xf32>
    %c0_56 = arith.constant 0 : index
    %c0_57 = arith.constant 0 : index
    %c0_58 = arith.constant 0 : index
    %157 = vector.load %arg9[%c0_56, %c0_57, %c0_58] : memref<1x24x128xf32, #tpu.memory_space<vmem>>, vector<1x24x128xf32>
    %158 = vector.shape_cast %157 : vector<1x24x128xf32> to vector<24x128xf32>
    %159 = vector.shape_cast %156 : vector<24x128xf32> to vector<1x24x128xf32>
    tpu.vector_store %arg9[%c0_56, %c0_57, %c0_58], %159 {strides = array<i32>} : memref<1x24x128xf32, #tpu.memory_space<vmem>>, vector<1x24x128xf32>,
    return
  }
  func.func @transform_0(%arg0: i32, %arg1: i32) -> (i32, i32, i32) {
    %c0_i32 = arith.constant 0 : i32
    %c0_i32_0 = arith.constant 0 : i32
    return %arg0, %c0_i32, %arg1 : i32, i32, i32
  }
  func.func @transform_1(%arg0: i32, %arg1: i32) -> (i32, i32, i32, i32) {
    %c0_i32 = arith.constant 0 : i32
    %c0_i32_0 = arith.constant 0 : i32
    %c0_i32_1 = arith.constant 0 : i32
    return %arg0, %arg1, %c0_i32, %c0_i32_0 : i32, i32, i32, i32
  }
  func.func @transform_2(%arg0: i32, %arg1: i32) -> (i32, i32, i32, i32) {
    %c0_i32 = arith.constant 0 : i32
    %c0_i32_0 = arith.constant 0 : i32
    %c0_i32_1 = arith.constant 0 : i32
    return %arg0, %arg1, %c0_i32, %c0_i32_0 : i32, i32, i32, i32
  }
  func.func @transform_3(%arg0: i32, %arg1: i32) -> (i32, i32) {
    %c0_i32 = arith.constant 0 : i32
    %c0_i32_0 = arith.constant 0 : i32
    %c0_i32_1 = arith.constant 0 : i32
    return %c0_i32, %c0_i32_0 : i32, i32
  }
  func.func @transform_4(%arg0: i32, %arg1: i32) -> (i32, i32) {
    %c0_i32 = arith.constant 0 : i32
    %c0_i32_0 = arith.constant 0 : i32
    %c0_i32_1 = arith.constant 0 : i32
    return %c0_i32, %c0_i32_0 : i32, i32
  }
  func.func @transform_5(%arg0: i32, %arg1: i32) -> (i32, i32) {
    %c0_i32 = arith.constant 0 : i32
    %c0_i32_0 = arith.constant 0 : i32
    %c0_i32_1 = arith.constant 0 : i32
    return %c0_i32, %c0_i32_0 : i32, i32
  }
  func.func @transform_6(%arg0: i32, %arg1: i32) -> (i32, i32) {
    %c0_i32 = arith.constant 0 : i32
    %c0_i32_0 = arith.constant 0 : i32
    %c0_i32_1 = arith.constant 0 : i32
    return %c0_i32, %c0_i32_0 : i32, i32
  }
  func.func @transform_7(%arg0: i32, %arg1: i32) -> (i32, i32, i32) {
    %c0_i32 = arith.constant 0 : i32
    %c0_i32_0 = arith.constant 0 : i32
    return %arg0, %c0_i32, %arg1 : i32, i32, i32
  }
}

</mosaic_0001>

<bundles_post_ra>
// kernel: tpu_custom_call.1
= control target key start
LH: loop header
LB: loop body
LE: loop exit
PB: predicated region body
PF: predicated region fallthrough
CT: control target
= control target key end

     0   :  { %s2067_s0 = inlined_call_operand.hbm [shape: f32[2,24,256], index: 0, kind: input, shape index: {}]   ;;  %s2068_s1 = inlined_call_operand.hbm [shape: f32[2,2,24,128], index: 1, kind: input, shape index: {}]   ;;  %s2069_s2 = inlined_call_operand.hbm [shape: f32[2,2,24,128], index: 2, kind: input, shape index: {}]   ;;  %s2070_s3 = inlined_call_operand.vmem [shape: f32[24,24], index: 3, kind: input, shape index: {}]   ;;  %s2071_s4 = inlined_call_operand.vmem [shape: f32[24,1], index: 4, kind: input, shape index: {}]   ;;  %s2072_s5 = inlined_call_operand.vmem [shape: f32[24,24], index: 5, kind: input, shape index: {}]   ;;  %s2073_s6 = inlined_call_operand.vmem [shape: f32[24,1], index: 6, kind: input, shape index: {}]   ;;  %s2074_s7 = inlined_call_operand.hbm [shape: f32[2,24,256], index: 7, kind: output, shape index: {}]  }
   0x1   :  { %2084 = sst [smem:[#allocation21_spill]] %s2068_s1 }
   0x2   :  { %2085 = sst [smem:[#allocation22_spill]] %s2069_s2 }
   0x3   :  { %2086 = sst [smem:[#allocation23_spill]] %s2070_s3 }
   0x4   :  { %2087 = sst [smem:[#allocation24_spill]] %s2074_s7 }
   0x5   :  { %12 = vsyncpa [#allocation4], 0 }
   0x6   :  { %14 = vsyncpa [#allocation4 + $0x1], 0 }
   0x7   :  { %15 = vsyncpa [#allocation7], 0 }
   0x8   :  { %17 = vsyncpa [#allocation7 + $0x1], 0 }
   0x9   :  { %18 = vsyncpa [#allocation5], 0 }
   0xa   :  { %20 = vsyncpa [#allocation5 + $0x1], 0  ;;  %s1680_s24 = smov 0   ;;  %s1682_s25 = smov 0  }
   0xb   :  { %s1684_s26 = smov 0   ;;  %s1686_s27 = smov 0  }
   0xc   :  { %s1688_s28 = smov 0   ;;  %s1690_s29 = smov 0  }
   0xd   :  { %s1692_s30 = smov 0   ;;  %s1694_s8 = smov 0  }
   0xe LB: > { %2088 = sst [smem:[#allocation13_spill]] %s1586_s24  ;;  %s1721_s9 = sadd.s32 4294967295, %s1614_s8   ;;  %s1614_s8 = sphi %s1694_s8, %s26_s8   ;;  %s1610_s30 = sphi %s1692_s30, %s2125_s30   ;;  %s1606_s29 = sphi %s1690_s29, %s2124_s29   ;;  %s1602_s28 = sphi %s1688_s28, %s2123_s28   ;;  %s1598_s27 = sphi %s1686_s27, %s2122_s27   ;;  %s1594_s26 = sphi %s1684_s26, %s2121_s26   ;;  %s1590_s25 = sphi %s1682_s25, %s2120_s25   ;;  %s1586_s24 = sphi %s1680_s24, %s2119_s24  }
   0xf   : > { %2089 = sst [smem:[#allocation14_spill]] %s1598_s27  ;;  %s1259_s10 = sadd.s32 4294967294, %s1614_s8  }
  0x10   : > { %2090 = sst [smem:[#allocation15_spill]] %s1602_s28  ;;  %s35_s11 = sadd.s32 1, %s1606_s29 }
  0x11   : > { %s38_s12 = sadd.s32 1, %s1610_s30  ;;  %p36_p0 = scmp.ge.s32.totalorder %s35_s11, 2 }
  0x12   : > { %s47_s13 = sadd.s32 1, %s1594_s26  ;;  %p54_p1 = scmp.ne.s32.totalorder %s1594_s26, %s1590_s25 }
  0x13   : > { %p55_p2 = scmp.eq.s32.totalorder %s1614_s8, 0  ;;  %s2127_s11 = smov (%p36_p0, %s35_s11), 0 }
  0x14   : > { %2091 = sst [smem:[#allocation16_spill]] %s2127_s11  ;;  %s2129_s12 = smov (!%p36_p0, %s38_s12), %s1610_s30 }
  0x15   : > { %s43_s14 = ssub.s32 %s1606_s29, %s2127_s11  ;;  %p1735_p3 = por %p55_p2, %p54_p1 }
  0x16   : > { %p40_p4 = scmp.ge.s32.totalorder %s2129_s12, 2  ;;  %p60_p5 = scmp.ne.s32.totalorder %s1590_s25, %s1586_s24 }
  0x17   : > { %p61_p6 = scmp.eq.s32.totalorder %s1721_s9, 0  ;;  %p226_p7 = scmp.eq.s32.totalorder %s1721_s9, 3 }
  0x18   : > { %s2131_s12 = smov (%p40_p4, %s2129_s12), 0  ;;  %p232_p10 = scmp.eq.s32.totalorder %s1259_s10, 3 }
  0x19   : > { %2093 = sst [smem:[#allocation17_spill]] %s2131_s12  ;;  %p1745_p8 = por %p61_p6, %p60_p5 }
  0x1a   : > { %p1749_p9 = por %p226_p7, %p54_p1  ;;  %s42_s18 = ssub.s32 %s1610_s30, %s2131_s12 }
  0x1b   : > { %s44_s19 = sor.u32 %s43_s14, %s42_s18  ;;  %p1755_p12 = por %p232_p10, %p60_p5 }
  0x1c   : > { %s2095_s17 = scalar_select %p1749_p9, 1, 0 }
  0x1d   : > { %p45_p11 = scmp.eq.s32.totalorder %s44_s19, 0  ;;  %p1330_p13 = scmp.lt.s32.totalorder %s1614_s8, 4 }
  0x1e   : > { %2096 = sst [smem:[#allocation18_spill]] %s2095_s17  ;;  %s2077_s21 = sand.u32 1, %s1594_s26  }
  0x1f   : > { %s2097_s20 = scalar_select %p1755_p12, 1, 0 }
  0x20   : > { %s1762_s22 = scalar_select %p45_p11, %s1594_s26, %s47_s13  }
  0x21   : > { %2098 = sst [smem:[#allocation19_spill]] %s2097_s20  ;;  %s1766_s23 = smul.u32 24, %s2077_s21 }
  0x22   : > { %2099 = sst [smem:[#allocation20_spill]] %s1762_s22  ;;  %p1770_p0 = pnand %p1330_p13, %p1735_p3 }
  0x23   : > { %s1299_s10 = smul.u32 6, %s1610_s30  ;;  %s286_s14 = sand.u32 1, %s1614_s8  }
  0x24   : > { %s1301_s18 = smul.u32 3, %s1606_s29  ;;  %s290_s19 = scalar_lea.vmem [#allocation6], %s1766_s23 }
  0x25   : > { %s299_s11 = sshll.u32 %s290_s19, 4  ;;  %p1265_p1 = scmp.ge.s32.totalorder %s1614_s8, 1  ;;  %s300_s11 = int_to_ptr.vmem [resolvable:$true] %s299_s11 }
  0x26   : > { %s296_s13 = sadd.s32 %s1301_s18, %s1299_s10  ;;  %p330_p2 = scmp.lt.s32.totalorder %s1614_s8, 5 }
  0x27   : > { %s1263_s22 = sshll.u32 %s296_s13, 7  ;;  %s2101_s1 = sld [smem:[#allocation21_spill]] }
  0x28   : > { %s2102_s2 = sld [smem:[#allocation22_spill]]  ;;  %s1790_s28 = scalar_lea.sflag [#allocation7], %s286_s14 }
  0x29   : > { %p1432_p3 = pneg %p1770_p0  ;;  %s1443_s19 = scalar_lea.vmem %s300_s11, 384 }
  0x2a   : > { %p1444_p4 = scmp.ne.s32.totalorder %s300_s11, %s1443_s19  ;;  %s1616_s18 = smov [#allocation6]  }
  0x2b   : > { %s1448_s13 = sshll.u32 %s1616_s18, 4  ;;  %s1449_s13 = int_to_ptr.vmem [resolvable:$false] %s1448_s13 }
  0x2c   : > { %p1446_p5 = pnand %p1444_p4, %p1432_p3  ;;  %s1450_s21 = scalar_lea.vmem %s1449_s13, 768 }
  0x2d   : > { %s298_s20 = scalar_lea.hbm %s2101_s1, %s1263_s22  ;;  %p1451_p7 = scmp.lt.s32.totalorder %s300_s11, %s1449_s13 }
  0x2e   : > { %s1788_s17 = scalar_lea.hbm %s2102_s2, %s1263_s22  ;;  %p1447_p6 = pneg %p1446_p5 }
  0x2f   : > { %p1452_p10 = scmp.lt.s32.totalorder %s1450_s21, %s1443_s19 }
  0x31   : > { %p1453_p11 = por %p1452_p10, %p1451_p7 }
  0x33   : > { %p1454_p13 = pnand %p1453_p11, %p1447_p6 }
  0x35   : > { %1457 = shalt.err (!%p1454_p13)
}
  0x36   : > { %s1617_s7 = smov 128   ;;  %s1618_s24 = smov 8  }
  0x37   : > { %1322 = dma.hbm_to_vmem [thread:$0]  (!%p1770_p0), %s298_s20, 384, %s300_s11, %s1790_s28, %s1617_s7, %s1617_s7, %s1618_s24  }
  0x38   : > { %p1807_p4 = pnand %p1265_p1, %p330_p2  ;;  %s273_s14 = sadd.s32 %s1606_s29, %s1299_s10 }
  0x39   : > { %s1262_s15 = sshll.u32 %s273_s14, 7  ;;  %s268_s19 = scalar_lea.vmem [#allocation3], %s1766_s23 }
  0x3a   : > { %s276_s18 = sshll.u32 %s268_s19, 4  ;;  %s275_s1 = scalar_lea.hbm %s2067_s0, %s1262_s15  ;;  %s277_s18 = int_to_ptr.vmem [resolvable:$true] %s276_s18 }
  0x3b   : > { %s2104_s2 = sand.u32 1, %s1594_s26   ;;  %s1471_s3 = scalar_lea.vmem %s277_s18, 384 }
  0x3c   : > { %s265_s27 = scalar_lea.sflag [#allocation4], %s2104_s2  ;;  %p1472_p5 = scmp.ne.s32.totalorder %s277_s18, %s1471_s3 }
  0x3d   : > { %s1619_s11 = smov [#allocation3]  }
  0x3e   : > { %p1474_p1 = pnand %p1472_p5, %p1432_p3  ;;  %s1476_s20 = sshll.u32 %s1619_s11, 4  ;;  %s1477_s20 = int_to_ptr.vmem [resolvable:$false] %s1476_s20 }
  0x3f   : > { %s1478_s10 = scalar_lea.vmem %s1477_s20, 768  ;;  %p1479_p6 = scmp.lt.s32.totalorder %s277_s18, %s1477_s20 }
  0x40   : > { %p1475_p2 = pneg %p1474_p1  ;;  %p1480_p7 = scmp.lt.s32.totalorder %s1478_s10, %s1471_s3 }
  0x42   : > { %p1481_p10 = por %p1480_p7, %p1479_p6 }
  0x44   : > { %p1482_p11 = pnand %p1481_p10, %p1475_p2 }
  0x46   : > { %1485 = shalt.err (!%p1482_p11)
}
  0x47   : > { %s1620_s14 = smov 256   ;;  %s313_s2 = scalar_lea.vmem [#allocation8], %s1766_s23 }
  0x48   : > { %1319 = dma.hbm_to_vmem [thread:$0]  (!%p1770_p0), %s275_s1, 384, %s277_s18, %s265_s27, %s1620_s14, %s1617_s7, %s1618_s24  }
  0x49   : > { %s322_s15 = sshll.u32 %s313_s2, 4  ;;  %s1621_s3 = smov [#allocation8]   ;;  %s323_s15 = int_to_ptr.vmem [resolvable:$true] %s322_s15 }
  0x4a   : > { %s1499_s19 = scalar_lea.vmem %s323_s15, 384  ;;  %s1504_s13 = sshll.u32 %s1621_s3, 4  ;;  %s1505_s13 = int_to_ptr.vmem [resolvable:$false] %s1504_s13 }
  0x4b   : > { %p1500_p13 = scmp.ne.s32.totalorder %s323_s15, %s1499_s19  ;;  %s1506_s21 = scalar_lea.vmem %s1505_s13, 768 }
  0x4c   : > { %p1507_p2 = scmp.lt.s32.totalorder %s323_s15, %s1505_s13  ;;  %p1508_p6 = scmp.lt.s32.totalorder %s1506_s21, %s1499_s19 }
  0x4d   : > { %p1502_p5 = pnand %p1500_p13, %p1432_p3 }
  0x4e   : > { %p1509_p7 = por %p1508_p6, %p1507_p2 }
  0x4f   : > { %p1503_p1 = pneg %p1502_p5 }
  0x51   : > { %p1510_p10 = pnand %p1509_p7, %p1503_p1 }
  0x53   : > { %1513 = shalt.err (!%p1510_p10)
}
  0x54   : > { %1325 = dma.hbm_to_vmem [thread:$0]  (!%p1770_p0), %s1788_s17, 384, %s323_s15, %s1790_s28, %s1617_s7, %s1617_s7, %s1618_s24  }
  0x55   : > { %334 = sbr.rel (%p1807_p4) target bundleno = 1044 (0x414), region = 48  ;;  %s1841_s1 = sand.u32 (!%p1807_p4), 1, %s1590_s25  }
  0x56   : > { %s1844_s27 = smul.u32 (!%p1807_p4), 24, %s1841_s1  ;;  %s337_s23 = scalar_lea.sflag (!%p1807_p4), [#allocation4], %s1841_s1 }
  0x58   : > { %s340_s12 = scalar_lea.vmem (!%p1807_p4), [#allocation3], %s1844_s27 }
  0x5a   : > { %1573 = dma.done.wait (%p1745_p8), %s337_s23, 384  }
  0x5b   : > { %1575 = vsyncadd (%p1745_p8), %s337_s23, 4294966912  ;;  %s345_s28 = sand.u32 1, %s1721_s9   ;;  %s1854_s7 = scalar_lea.vmem [#allocation6], %s1844_s27 }
  0x5c   : > { %s346_s17 = scalar_lea.sflag [#allocation7], %s345_s28 }
  0x5d   : > { %1577 = dma.done.wait (%p1745_p8), %s346_s17, 768  }
  0x5e   : > { %1579 = vsyncadd (%p1745_p8), %s346_s17, 4294966528  ;;  %v1863_v0 = vld [vmem:[%s2072_s5] sm:$0xff]  ;;  %v1868_v1 = vld [vmem:[%s2072_s5 + $0x8] sm:$0xff]  ;;  %v1622_v3 = vmov 0.0   ;;  %s1623_s3 = smov 32   ;;  %s358_s13 = scalar_lea.vmem [#allocation8], %s1844_s27 }
  0x5f   : > { %v1873_v2 = vld [vmem:[%s2072_s5 + $0x10] sm:$0xff]  ;;  %540 = vmatprep.mubr.f32.mxu0 %v1622_v3  ;;  %v1879_v4 = vld [vmem:[%s2073_s6] sm:$0xff]  ;;  %v1884_v5 = vld [vmem:[%s2073_s6 + $0x8] sm:$0xff]  ;;  %v1624_v13 = vmov 0   ;;  %vm444_vm0 = vcmask 261120   ;;  %s2105_s11 = sld [smem:[#allocation23_spill]] }
  0x60   : > { %v1889_v6 = vld [vmem:[%s2073_s6 + $0x10] sm:$0xff]  ;;  %v417_v11 = vld [vmem:[%s358_s13] sm:$0xff]  ;;  %1416 = vset.pattern.permute.xlu0 %v1624_v13  ;;  %1417 = vset.pattern.permute.xlu1 %v1624_v13  ;;  %v415_v23 = vld [vmem:[%s1854_s7 + $0x8] sm:$0xff]  ;;  %vm466_vm1 = vcmask 195584   ;;  %vm566_vm2 = vcmask 523264   ;;  %s1939_s10 = scalar_lea.vmem [#allocation9], %s1844_s27 }
  0x61   : > { %v1891_v7 = vld [vmem:[%s340_s12 + $0x10] sm:$0xff]  ;;  %v1893_v8 = vld [vmem:[%s340_s12 + $0x8] sm:$0xff]  ;;  %v1898_v12 = vld [vmem:[%s340_s12] sm:$0xff]  ;;  %s2106_s14 = sld [smem:[#allocation14_spill]] }
  0x62   : > { %427 = vrot.lane.b32.xlu0 %v1891_v7, %s1623_s3  ;;  %425 = vrot.lane.b32.xlu1 %v1893_v8, %s1623_s3  ;;  %v419_v9 = vld [vmem:[%s358_s13 + $0x10] sm:$0xff]  ;;  %v418_v10 = vld [vmem:[%s358_s13 + $0x8] sm:$0xff] }
  0x63   : > { %v405_v14 = vld [vmem:[%s2071_s4] sm:$0xff]  ;;  %v406_v15 = vld [vmem:[%s2071_s4 + $0x8] sm:$0xff]  ;;  %v407_v16 = vld [vmem:[%s2071_s4 + $0x10] sm:$0xff] }
  0x64   : > { %v416_v19 = vld [vmem:[%s1854_s7 + $0x10] sm:$0xff]  ;;  %v414_v25 = vld [vmem:[%s1854_s7] sm:$0xff] }
  0x65   : > { %v399_v32 = vld [vmem:[%s2105_s11] sm:$0xff]  ;;  %v400_v33 = vld [vmem:[%s2105_s11 + $0x8] sm:$0xff]  ;;  %v401_v34 = vld [vmem:[%s2105_s11 + $0x10] sm:$0xff] }
  0x66   : > { %439 = vrot.lane.b32.xlu0 %v419_v9, %s1623_s3  ;;  %437 = vrot.lane.b32.xlu1 %v418_v10, %s1623_s3 }
  0x67   : > { %p1269_p8 = scmp.ne.s32.totalorder %s2106_s14, 0 }
  0x6a   : > { %435 = vrot.lane.b32.xlu1 %v417_v11, %s1623_s3  ;;  %423 = vrot.lane.b32.xlu0 %v1898_v12, %s1623_s3 }
  0x6e   : > { %453 = vperm.xlu0 %1416, %v405_v14   ;;  %458 = vperm.xlu1 %1417, %v406_v15  }
  0x72   : > { %463 = vperm.xlu1 %1417, %v407_v16  }
  0xd4   : > { %v428_v17 = vpop.permute.xlu0 %427  ;;  %v426_v18 = vpop.permute.xlu1 %425 }
  0xd5   : > { %v447_v24 = vsel %vm444_vm0, %v416_v19, %v428_v17  ;;  %v446_v29 = vsel %vm444_vm0, %v415_v23, %v426_v18 }
  0xd8   : > { %v440_v20 = vpop.permute.xlu0 %439  ;;  %v438_v21 = vpop.permute.xlu1 %437 }
  0xd9   : > { %v450_v22 = vsel %vm444_vm0, %v428_v17, %v440_v20  ;;  %v449_v26 = vsel %vm444_vm0, %v426_v18, %v438_v21 }
  0xda   : > { %502 = vmatprep.subr.mxu0 %v450_v22 }
  0xdb   : > { %503 = vmatpush1.msra.mxu0 %v447_v24 }
  0xdc   : > { %504 = vmatprep.subr.mxu0 %v449_v26  ;;  %v436_v27 = vpop.permute.xlu1 %435  ;;  %v424_v28 = vpop.permute.xlu0 %423 }
  0xdd   : > { %505 = vmatpush1.msra.mxu0 %v446_v29  ;;  %v448_v30 = vsel %vm444_vm0, %v424_v28, %v436_v27  ;;  %v445_v31 = vsel %vm444_vm0, %v414_v25, %v424_v28 }
  0xde   : > { %506 = vmatprep.subr.mxu0 %v448_v30 }
  0xdf   : > { %507 = vmatpush1.msra.mxu0 %v445_v31 }
  0xe0   : > { %1266 = vmatmul.mubr.msk.f32.vlgmr.msra.gmra.mxu0 %vm466_vm1, %v399_v32 }
  0xe1   : > { %546 = vmatprep.mubr.f32.mxu0 %v1622_v3 }
  0xe4   : > { %1267 = vmatmul.mubr.msk.f32.gmra.mxu0 %vm466_vm1, %v400_v33 }
  0xe5   : > { %552 = vmatprep.mubr.f32.mxu0 %v1622_v3 }
  0xe8   : > { %1268 = vmatmul.mubr.msk.f32.gmra.mxu0 %vm466_vm1, %v401_v34 }
  0xe9   : > { %v454_v35 = vpop.permute.xlu0 %453  ;;  %v459_v38 = vpop.permute.xlu1 %458 }
  0xed   : > { %v464_v48 = vpop.permute.xlu1 %463 }
 0x1a0   : > { %v542_v36 = vpop.f32.mrf.mxu0 }
 0x1a1   : > { %v543_v37 = vadd.f32 %v542_v36, %v454_v35 }
 0x1a2   : > { %v544_v39 = vpop.f32.mrf.mxu0 }
 0x1a3   : > { %v559_v40 = vmax.f32 %v543_v37, 0.0  ;;  %v545_v41 = vadd.f32 %v544_v39, %v454_v35 }
 0x1a4   : > { %v548_v42 = vpop.f32.mrf.mxu0 }
 0x1a5   : > { %565 = vst [vmem:[#allocation2 + $0x8] sm:$0xff] %v559_v40  ;;  %v560_v43 = vmax.f32 %v545_v41, 0.0  ;;  %v549_v44 = vadd.f32 %v548_v42, %v459_v38 }
 0x1a6   : > { %v550_v45 = vpop.f32.mrf.mxu0 }
 0x1a7   : > { %567 = vst.msk [vmem:[#allocation2 + $0x10] sm:$0xff] %vm566_vm2, %v560_v43  ;;  %v561_v46 = vmax.f32 %v549_v44, 0.0  ;;  %v551_v47 = vadd.f32 %v550_v45, %v459_v38 }
 0x1a8   : > { %v554_v49 = vpop.f32.mrf.mxu0 }
 0x1a9   : > { %568 = vst [vmem:[#allocation2 + $0x20] sm:$0xff] %v561_v46  ;;  %v562_v50 = vmax.f32 %v551_v47, 0.0  ;;  %v555_v51 = vadd.f32 %v554_v49, %v464_v48 }
 0x1aa   : > { %v556_v52 = vpop.f32.mrf.mxu0 }
 0x1ab   : > { %569 = vst.msk [vmem:[#allocation2 + $0x28] sm:$0xff] %vm566_vm2, %v562_v50  ;;  %v563_v53 = vmax.f32 %v555_v51, 0.0  ;;  %v557_v54 = vadd.f32 %v556_v52, %v464_v48  ;;  %575 = sbr.rel (%p1269_p8) target bundleno = 435 (0x1b3), region = 64 }
 0x1ad   : > { %570 = vst [vmem:[#allocation2 + $0x38] sm:$0xff] %v563_v53  ;;  %v564_v55 = vmax.f32 %v557_v54, 0.0 }
 0x1af   : > { %571 = vst.msk [vmem:[#allocation2 + $0x40] sm:$0xff] %vm566_vm2, %v564_v55 }
 0x1b0   : > { %v1625_v56 = vmov 0.0  }
 0x1b1   : > { %576 = vst.msk [vmem:[#allocation2 + $0x8] sm:$0xff] %vm444_vm0, %v1625_v56  ;;  %577 = vst.msk [vmem:[#allocation2 + $0x20] sm:$0xff] %vm444_vm0, %v1625_v56 }
 0x1b2   : > { %578 = vst.msk [vmem:[#allocation2 + $0x38] sm:$0xff] %vm444_vm0, %v1625_v56 }
 0x1b3 PF: > { %s2107_s2 = sld [smem:[#allocation14_spill]] }
 0x1b9   : > { %p1270_p0 = scmp.ne.s32.totalorder %s2107_s2, 1 }
 0x1bb   : > { %582 = sbr.rel (%p1270_p0) target bundleno = 451 (0x1c3), region = 68 }
 0x1c0   : > { %vm583_vm3 = vcmask 523520   ;;  %v1626_v57 = vmov 0.0  }
 0x1c1   : > { %584 = vst.msk [vmem:[#allocation2 + $0x10] sm:$0xff] %vm583_vm3, %v1626_v57  ;;  %585 = vst.msk [vmem:[#allocation2 + $0x28] sm:$0xff] %vm583_vm3, %v1626_v57 }
 0x1c2   : > { %586 = vst.msk [vmem:[#allocation2 + $0x40] sm:$0xff] %vm583_vm3, %v1626_v57 }
 0x1c3 PF: > { %1283 = vmatprep.subr.mxu1 %v1622_v3  ;;  %1428 = vset.pattern.permute.xlu1 %v1624_v13  ;;  %s1627_s27 = smov 126   ;;  %s1628_s15 = smov 96   ;;  %v618_v59 = vld [vmem:[#allocation2 + $0x20] sm:$0xff]  ;;  %v616_v61 = vld [vmem:[#allocation2 + $0x8] sm:$0xff]  ;;  %v587_v62 = vlaneseq  ;;  %vm697_vm4 = vcmask 785408   ;;  %vm663_vm5 = vcmask 1031168  }
 0x1c4   : > { %1429 = vset.pattern.permute.xlu0 %v1624_v13  ;;  %s1629_s19 = smov 94   ;;  %s1630_s3 = smov 62   ;;  %vm728_vm6 = vcmask 769024   ;;  %vm768_vm13 = vcmask 506880   ;;  %v852_v41 = vld [vmem:[#allocation2 + $0x30] sm:$0xff]  ;;  %v798_v42 = vld [vmem:[#allocation2 + $0x38] sm:$0xff] }
 0x1c5   : > { %1419 = vrot.lane.b32.xlu0 %v1622_v3, %s1628_s15  ;;  %v1951_v9 = vand.u32 127, %v587_v62  ;;  %v604_v14 = vshrl.u32 %v587_v62, 7  ;;  %s1631_s13 = smov 64   ;;  %s1632_s21 = smov 2  }
 0x1c6   : > { %s1633_s23 = smov 98   ;;  %s1634_s28 = smov 66  }
 0x1c7   : > { %v593_v16 = vand.u32 15, %v1951_v9  ;;  %v605_v21 = vadd.s32 8, %v604_v14  ;;  %v606_v44 = vadd.s32 16, %v604_v14  ;;  %s2110_s17 = sld [smem:[#allocation15_spill]]  ;;  %s1121_s9 = sshll.u32 %s1939_s10, 4  ;;  %s2012_s9 = int_to_ptr.vmem [resolvable:$true] %s1121_s9 }
 0x1c8   : > { %v619_v58 = vld [vmem:[#allocation2 + $0x28] sm:$0xff]  ;;  %v617_v60 = vld [vmem:[#allocation2 + $0x10] sm:$0xff]  ;;  %s2111_s12 = sld [smem:[#allocation14_spill]] }
 0x1c9   : > { %657 = vrot.lane.b32.xlu1 %v619_v58, %s1627_s27  ;;  %655 = vrot.lane.b32.xlu0 %v618_v59, %s1627_s27  ;;  %vm1958_vm7 = vcmp.lt.s32.totalorder %v593_v16, 14  ;;  %vm708_vm8 = vcmp.ge.s32.totalorder %v605_v21, 10  ;;  %vm711_vm9 = vcmp.lt.s32.totalorder %v605_v21, 12  ;;  %vm748_vm10 = vcmp.ge.s32.totalorder %v605_v21, 12  ;;  %v621_v43 = vld [vmem:[#allocation2 + $0x40] sm:$0xff]  ;;  %s2113_s14 = sld [smem:[#allocation24_spill]] }
 0x1ca   : > { %vm751_vm11 = vcmp.lt.s32.totalorder %v605_v21, 14  ;;  %vm638_vm12 = vcmp.lt.s32.totalorder %v605_v21, 10  ;;  %vm714_vm14 = vmand %vm708_vm8, %vm711_vm9  ;;  %vm788_vm0 = vcmp.ge.s32.totalorder %v605_v21, 14  ;;  %vm813_vm3 = vcmp.lt.s32.totalorder %v606_v44, 18  ;;  %s1107_s27 = scalar_lea.sflag [#allocation5], %s1841_s1 }
 0x1cb   : > { %vm754_vm15 = vmand %vm748_vm10, %vm751_vm11  ;;  %vm843_vm8 = vcmp.ge.s32.totalorder %v606_v44, 18  ;;  %vm846_vm9 = vcmp.lt.s32.totalorder %v606_v44, 20  ;;  %vm918_vm10 = vcmp.ge.s32.totalorder %v606_v44, 20  ;;  %vm921_vm11 = vcmp.lt.s32.totalorder %v606_v44, 22 }
 0x1cd   : > { %1424 = vrot.lane.b32.xlu1 %v1622_v3, %s1628_s15  ;;  %720 = vrot.lane.b32.xlu0 %v618_v59, %s1629_s19  ;;  %s1307_s24 = smul.u32 6, %s2110_s17 }
 0x1cf   : > { %s1118_s22 = sadd.s32 %s2111_s12, %s1307_s24 }
 0x1d0   : > { %s1274_s7 = sshll.u32 %s1118_s22, 7 }
 0x1d1   : > { %722 = vrot.lane.b32.xlu1 %v619_v58, %s1629_s19  ;;  %760 = vrot.lane.b32.xlu0 %v618_v59, %s1630_s3  ;;  %s2010_s2 = scalar_lea.hbm %s2113_s14, %s1274_s7  ;;  %s1636_s19 = smov [#allocation9]  }
 0x1d5   : > { %762 = vrot.lane.b32.xlu1 %v619_v58, %s1630_s3  ;;  %685 = vrot.lane.b32.xlu0 %v616_v61, %s1628_s15  ;;  %s1518_s3 = sshll.u32 %s1636_s19, 4  ;;  %s1519_s3 = int_to_ptr.vmem [resolvable:$false] %s1518_s3 }
 0x1d6   : > { %p1521_p13 = scmp.lt.s32.totalorder %s2012_s9, %s1519_s3 }
 0x1d9   : > { %687 = vrot.lane.b32.xlu1 %v617_v60, %s1628_s15  ;;  %s1514_s15 = scalar_lea.vmem %s2012_s9, 384 }
 0x1da   : > { %p1515_p3 = scmp.ne.s32.totalorder %s2012_s9, %s1514_s15 }
 0x1dc   : > { %p1516_p4 = pnand %p1515_p3, %p1749_p9 }
 0x1de   : > { %p1517_p11 = pneg %p1516_p4 }
 0x237   : > { %v1420_v10 = vpop.permute.xlu0 %1419 }
 0x238   : > { %v1422_v11 = vunpack.i.h.bf16 %v1420_v10  ;;  %v1421_v13 = vunpack.i.l.bf16 %v1420_v10 }
 0x23a   : > { %v700_v17 = vsel %vm697_vm4, %v1421_v13, %v1422_v11 }
 0x23b   : > { %v658_v63 = vpop.permute.xlu1 %657  ;;  %v656_v18 = vpop.permute.xlu0 %655  ;;  %830 = vrot.lane.b32.xlu0 %v700_v17, %s1631_s13 }
 0x23c   : > { %v665_v23 = vsel %vm663_vm5, %v656_v18, %v658_v63  ;;  %vm937_vm5 = vcmask 801792  }
 0x23d   : > { %v671_v27 = vsel %vm1958_vm7, %v665_v23, 0.0 }
 0x23f   : > { %v1425_v15 = vpop.permute.xlu1 %1424  ;;  %v721_v25 = vpop.permute.xlu0 %720 }
 0x240   : > { %v1427_v19 = vunpack.i.h.bf16 %v1425_v15  ;;  %v1426_v20 = vunpack.i.l.bf16 %v1425_v15 }
 0x242   : > { %v699_v28 = vsel %vm697_vm4, %v1426_v20, %v1427_v19 }
 0x243   : > { %v723_v24 = vpop.permute.xlu1 %722  ;;  %v761_v31 = vpop.permute.xlu0 %760  ;;  %v705_v32 = vsel %vm638_vm12, %v671_v27, %v699_v28  ;;  %vm601_vm12 = vcmp.ge.s32.totalorder %v593_v16, 2 }
 0x244   : > { %v730_v26 = vsel %vm728_vm6, %v721_v25, %v723_v24  ;;  %vm873_vm6 = vcmask 15360  }
 0x245   : > { %v736_v29 = vsel %vm1958_vm7, %v730_v26, 0.0 }
 0x246   : > { %v745_v34 = vsel %vm714_vm14, %v736_v29, %v705_v32  ;;  %vm924_vm14 = vmand %vm918_vm10, %vm921_vm11 }
 0x247   : > { %v763_v30 = vpop.permute.xlu1 %762  ;;  %v686_v39 = vpop.permute.xlu0 %685 }
 0x248   : > { %v770_v33 = vsel %vm768_vm13, %v761_v31, %v763_v30  ;;  %vm849_vm13 = vmand %vm843_vm8, %vm846_vm9 }
 0x249   : > { %v776_v35 = vsel %vm1958_vm7, %v770_v33, 0.0  ;;  %vm977_vm7 = vcmask 539648  }
 0x24a   : > { %v785_v36 = vsel %vm754_vm15, %v776_v35, %v745_v34  ;;  %vm958_vm15 = vcmp.ge.s32.totalorder %v606_v44, 22 }
 0x24b   : > { %v688_v37 = vpop.permute.xlu1 %687  ;;  %v806_v38 = vsel %vm788_vm0, %v618_v59, %v785_v36 }
 0x24c   : > { %828 = vrot.lane.b32.xlu1 %v806_v38, %s1631_s13  ;;  %v698_v40 = vsel %vm697_vm4, %v686_v39, %v688_v37  ;;  %vm1635_vm4 = vmmov 0  }
 0x24d   : > { %826 = vrot.lane.b32.xlu0 %v698_v40, %s1631_s13  ;;  %1289 = vmatprep.mubr.msk.f32.mxu1 %vm1635_vm4, %v1622_v3 }
 0x250   : > { %869 = vrot.lane.b32.xlu1 %v852_v41, %s1632_s21 }
 0x251   : > { %871 = vrot.lane.b32.xlu0 %v798_v42, %s1632_s21 }
 0x254   : > { %933 = vrot.lane.b32.xlu1 %v798_v42, %s1633_s23 }
 0x255   : > { %935 = vrot.lane.b32.xlu0 %v621_v43, %s1633_s23 }
 0x258   : > { %973 = vrot.lane.b32.xlu1 %v798_v42, %s1634_s28 }
 0x259   : > { %975 = vrot.lane.b32.xlu0 %v621_v43, %s1634_s28 }
 0x2ad   : > { %v831_v45 = vpop.permute.xlu0 %830 }
 0x2ae   : > { %v840_v46 = vsel %vm813_vm3, %v621_v43, %v831_v45  ;;  %v839_v47 = vsel %vm813_vm3, %v798_v42, %v831_v45 }
 0x2af   : > { %905 = vrot.lane.b32.xlu0 %v840_v46, %s1631_s13  ;;  %903 = vrot.lane.b32.xlu1 %v839_v47, %s1631_s13 }
 0x2be   : > { %v829_v48 = vpop.permute.xlu1 %828 }
 0x2bf   : > { %901 = vrot.lane.b32.xlu0 %v829_v48, %s1631_s13  ;;  %899 = vrot.lane.b32.xlu1 %v829_v48, %s1631_s13  ;;  %v827_v49 = vpop.permute.xlu0 %826 }
 0x2c2   : > { %v870_v51 = vpop.permute.xlu1 %869 }
 0x2c3   : > { %897 = vrot.lane.b32.xlu0 %v827_v49, %s1631_s13  ;;  %895 = vrot.lane.b32.xlu1 %v827_v49, %s1631_s13  ;;  %v872_v50 = vpop.permute.xlu0 %871  ;;  %s1520_s13 = scalar_lea.vmem %s1519_s3, 768 }
 0x2c4   : > { %p1522_p5 = scmp.lt.s32.totalorder %s1520_s13, %s1514_s15 }
 0x2c6   : > { %v934_v53 = vpop.permute.xlu1 %933  ;;  %p1523_p1 = por %p1522_p5, %p1521_p13 }
 0x2c7   : > { %998 = vperm.xlu1 %1428, %v1879_v4   ;;  %1003 = vperm.xlu0 %1429, %v1884_v5   ;;  %v936_v52 = vpop.permute.xlu0 %935  ;;  %v876_v4 = vsel %vm873_vm6, %v870_v51, %v872_v50 }
 0x2c8   : > { %v940_v56 = vsel %vm937_vm5, %v934_v53, %v936_v52  ;;  %v882_v59 = vsel %vm601_vm12, %v876_v4, 0.0  ;;  %p1524_p2 = pnand %p1523_p1, %p1517_p11 }
 0x2ca   : > { %v974_v55 = vpop.permute.xlu1 %973 }
 0x2cb   : > { %1008 = vperm.xlu1 %1428, %v1889_v6   ;;  %v976_v54 = vpop.permute.xlu0 %975  ;;  %v946_v6 = vsel %vm601_vm12, %v940_v56, 0.0 }
 0x2cc   : > { %v980_v5 = vsel %vm977_vm7, %v974_v55, %v976_v54 }
 0x2cd   : > { %v986_v61 = vsel %vm601_vm12, %v980_v5, 0.0 }
 0x321   : > { %v906_v57 = vpop.permute.xlu0 %905  ;;  %v904_v58 = vpop.permute.xlu1 %903 }
 0x322   : > { %v909_v60 = vsel %vm566_vm2, %v904_v58, %v906_v57 }
 0x323   : > { %v915_v62 = vsel %vm849_vm13, %v882_v59, %v909_v60 }
 0x324   : > { %v955_v63 = vsel %vm924_vm14, %v946_v6, %v915_v62 }
 0x325   : > { %v995_v10 = vsel %vm958_vm15, %v986_v61, %v955_v63 }
 0x326   : > { %1284 = vmatpush3.msra.mxu1 %v995_v10 }
 0x327   : > { %1285 = vmatprep.subr.mxu1 %v1622_v3 }
 0x331   : > { %v902_v9 = vpop.permute.xlu0 %901  ;;  %v900_v11 = vpop.permute.xlu1 %899 }
 0x332   : > { %v908_v13 = vsel %vm566_vm2, %v900_v11, %v902_v9 }
 0x333   : > { %1286 = vmatpush3.msra.mxu1 %v908_v13 }
 0x334   : > { %1287 = vmatprep.subr.mxu1 %v1622_v3 }
 0x335   : > { %v898_v14 = vpop.permute.xlu0 %897  ;;  %v896_v15 = vpop.permute.xlu1 %895 }
 0x336   : > { %v907_v16 = vsel %vm566_vm2, %v896_v15, %v898_v14 }
 0x337   : > { %1288 = vmatpush3.msra.mxu1 %v907_v16 }
 0x338   : > { %1290 = vmatmul.mubr.msk.f32.vlgmr.msra.gmra.mxu1 %vm466_vm1, %v1863_v0 }
 0x339   : > { %1292 = vmatprep.mubr.msk.f32.mxu1 %vm1635_vm4, %v1622_v3 }
 0x33c   : > { %1293 = vmatmul.mubr.msk.f32.gmra.mxu1 %vm466_vm1, %v1868_v1 }
 0x33d   : > { %1295 = vmatprep.mubr.msk.f32.mxu1 %vm1635_vm4, %v1622_v3 }
 0x340   : > { %1296 = vmatmul.mubr.msk.f32.gmra.mxu1 %vm466_vm1, %v1873_v2 }
 0x342   : > { %v999_v17 = vpop.permute.xlu1 %998  ;;  %v1004_v0 = vpop.permute.xlu0 %1003 }
 0x346   : > { %v1009_v23 = vpop.permute.xlu1 %1008 }
 0x3f8   : > { %v1086_v18 = vpop.f32.mrf.mxu1 }
 0x3f9   : > { %v1087_v19 = vadd.f32 %v1086_v18, %v999_v17 }
 0x3fa   : > { %v1291_v20 = vpop.f32.mrf.mxu1 }
 0x3fb   : > { %v1100_v21 = vadd.f32 %v1087_v19, %v1898_v12 }
 0x3fc   : > { %v1091_v22 = vpop.f32.mrf.mxu1 }
 0x3fd   : > { %1103 = vst [vmem:[%s1939_s10] sm:$0xff] %v1100_v21  ;;  %v1092_v1 = vadd.f32 %v1091_v22, %v1004_v0 }
 0x3fe   : > { %v1294_v3 = vpop.f32.mrf.mxu1 }
 0x3ff   : > { %v1101_v2 = vadd.f32 %v1092_v1, %v1893_v8 }
 0x400   : > { %v1096_v24 = vpop.f32.mrf.mxu1 }
 0x401   : > { %1104 = vst [vmem:[%s1939_s10 + $0x8] sm:$0xff] %v1101_v2  ;;  %v1097_v25 = vadd.f32 %v1096_v24, %v1009_v23 }
 0x402   : > { %v1297_v12 = vpop.f32.mrf.mxu1 }
 0x403   : > { %v1102_v26 = vadd.f32 %v1097_v25, %v1891_v7 }
 0x405   : > { %1105 = vst [vmem:[%s1939_s10 + $0x10] sm:$0xff] %v1102_v26 }
 0x406   : > { %1527 = shalt.err (!%p1524_p2)
}
 0x407   : > { %s1528_s10 = scalar_lea.hbm %s2010_s2, 384  ;;  %s1532_s28 = scalar_lea.hbm %s2113_s14, 1536 }
 0x408   : > { %p1529_p6 = scmp.ne.s32.totalorder %s2010_s2, %s1528_s10  ;;  %p1533_p8 = scmp.lt.s32.totalorder %s2010_s2, %s2113_s14 }
 0x409   : > { %p1534_p0 = scmp.lt.s32.totalorder %s1532_s28, %s1528_s10 }
 0x40a   : > { %p1530_p7 = pnand %p1529_p6, %p1749_p9 }
 0x40b   : > { %p1535_p3 = por %p1534_p0, %p1533_p8 }
 0x40c   : > { %p1531_p10 = pneg %p1530_p7 }
 0x40e   : > { %p1536_p4 = pnand %p1535_p3, %p1531_p10 }
 0x410   : > { %1539 = shalt.err (!%p1536_p4)
}
 0x411   : > { %s1637_s24 = smov 128   ;;  %s1638_s22 = smov 256  }
 0x412   : > { %s1639_s7 = smov 8  }
 0x413   : > { %1314 = dma.vmem_to_hbm [thread:$0]  (%p1749_p9), %s2012_s9, 384, %s2010_s2, %s1107_s27, %s1637_s24, %s1638_s22, %s1639_s7  }
 0x414 PF: > { %s2114_s20 = sld [smem:[#allocation13_spill]]  ;;  %p1331_p11 = scmp.ge.s32.totalorder %s1614_s8, 2 }
 0x416   : > { %p1327_p13 = pnand %p1331_p11, %p1755_p12 }
 0x418   : > { %p1328_p5 = pneg %p1327_p13 }
 0x41a   : > { %s1136_s15 = sand.u32 1, %s2114_s20  }
 0x41b   : > { %s1137_s19 = scalar_lea.sflag [#allocation5], %s1136_s15 }
 0x41c   : > { %1581 = dma.done.wait (%p1328_p5), %s1137_s19, 384  }
 0x41d   : > { %1583 = vsyncadd (%p1328_p5), %s1137_s19, 4294966912  ;;  %s26_s8 = sadd.s32 1, %s1614_s8   ;;  %s2116_s18 = sld [smem:[#allocation20_spill]] }
 0x41e   : > { %p23_p1 = scmp.ge.s32.totalorder %s26_s8, 6   ;;  %s2117_s1 = sld [smem:[#allocation16_spill]] }
 0x41f   : > { %s2118_s9 = sld [smem:[#allocation17_spill]]  ;;  %s2119_s24 = smov %s1590_s25 }
 0x420   : > { %s2120_s25 = smov %s1594_s26  ;;  %s2122_s27 = smov %s1606_s29 }
 0x421   : > { %s2123_s28 = smov %s1610_s30  ;;  %25 = sbr.rel (!%p23_p1) target bundleno = 14 (0xe), region = 125 }
 0x423   : > { %s2121_s26 = smov %s2116_s18 }
 0x424   : > { %s2124_s29 = smov %s2117_s1 }
 0x425   : > { %s2125_s30 = smov %s2118_s9 }
 0x426   :  { %1142 = vsyncpa [#allocation4], 1 }
 0x427   :  { %1144 = vsyncpa [#allocation4 + $0x1], 1 }
 0x428   :  { %1145 = vsyncpa [#allocation7], 1 }
 0x429   :  { %1147 = vsyncpa [#allocation7 + $0x1], 1 }
 0x42a   :  { %1148 = vsyncpa [#allocation5], 1 }
 0x42b   :  { %1150 = vsyncpa [#allocation5 + $0x1], 1 }

</bundles_post_ra>
